<compile_context>
chip_gen: v7x
topology: tpu7x:2x2x1
jax: 0.10.0
libtpu: 0.0.40
codegen_flags: <defaults>
</compile_context>

<pallas_src>
import functools

import jax
import jax.numpy as jnp
from jax.experimental import pallas as pl
from jax.experimental.pallas import tpu as pltpu


def _qnet_kernel(x_ref, w1_ref, b1_ref, w2_ref, b2_ref, w3_ref, b3_ref, o_ref):
    # x  : (4,  Bt)   w1: (24, 4)   b1: (24, 1)
    # h1 : (24, Bt)   w2: (24, 24)  b2: (24, 1)
    # h2 : (24, Bt)   w3: (2,  24)  b3: (2,  1)
    # out: (2,  Bt)   -- batch stays on the lane axis end-to-end.
    x = x_ref[...]
    h1 = jnp.dot(w1_ref[...], x, preferred_element_type=jnp.float32) + b1_ref[...]
    h1 = jnp.maximum(h1, 0.0)
    h2 = jnp.dot(w2_ref[...], h1, preferred_element_type=jnp.float32) + b2_ref[...]
    h2 = jnp.maximum(h2, 0.0)
    out = jnp.dot(w3_ref[...], h2, preferred_element_type=jnp.float32) + b3_ref[...]
    o_ref[...] = out.astype(o_ref.dtype)


@functools.partial(jax.jit, static_argnames=("b_tile",))
def qnetwork_forward(x, w1, b1, w2, b2, w3, b3, *, b_tile=512):
    """x: (B, 4) observations -> (B, 2) Q-values.

    Weights are in PyTorch nn.Linear (out, in) layout; biases are (out, 1).
    """
    batch, in_dim = x.shape
    out_dim = w3.shape[0]

    # Batch tile: full batch for small inputs (single grid step; block shape ==
    # full array so the (8,128) rule is trivially satisfied), otherwise a
    # 128-multiple tile; pad ragged batches so the grid divides evenly.
    if batch <= b_tile:
        bt = batch
        padded = batch
    else:
        bt = b_tile
        padded = ((batch + bt - 1) // bt) * bt

    x_t = x.T  # (in_dim, B): batch on lanes.
    if padded != batch:
        x_t = jnp.pad(x_t, ((0, 0), (0, padded - batch)))

    grid = (padded // bt,)

    # Weights/biases: full-extent blocks with a constant index_map -> fetched
    # once and kept VMEM-resident across all batch tiles.
    def weight_spec(a):
        return pl.BlockSpec(a.shape, lambda i: (0, 0))

    n_param_bytes = 4 * (w1.size + b1.size + w2.size + b2.size + w3.size + b3.size)
    cost = pl.CostEstimate(
        flops=2 * batch * (in_dim * 24 + 24 * 24 + 24 * out_dim),
        transcendentals=0,
        bytes_accessed=4 * batch * (in_dim + out_dim) + n_param_bytes,
    )

    out_t = pl.pallas_call(
        _qnet_kernel,
        out_shape=jax.ShapeDtypeStruct((out_dim, padded), jnp.float32),
        grid=grid,
        in_specs=[
            pl.BlockSpec((in_dim, bt), lambda i: (0, i)),  # x tiles stream in
            weight_spec(w1), weight_spec(b1),
            weight_spec(w2), weight_spec(b2),
            weight_spec(w3), weight_spec(b3),
        ],
        out_specs=pl.BlockSpec((out_dim, bt), lambda i: (0, i)),
        compiler_params=pltpu.CompilerParams(
            dimension_semantics=("parallel",),  # lets v7x use both TensorCores
        ),
        cost_estimate=cost,
    )(x_t, w1, b1, w2, b2, w3, b3)

    return out_t[:, :batch].T  # (B, 2)


def init_params(key):
    """nn.Linear-style init: uniform(-1/sqrt(fan_in), +1/sqrt(fan_in)).

    Weights stored (out, in) like PyTorch; biases stored as (out, 1) columns so
    they broadcast along the lane (batch) axis inside the kernel."""
    def linear(k, fan_in, fan_out):
        kw, kb = jax.random.split(k)
        bound = 1.0 / jnp.sqrt(fan_in)
        w = jax.random.uniform(kw, (fan_out, fan_in), jnp.float32, -bound, bound)
        b = jax.random.uniform(kb, (fan_out, 1), jnp.float32, -bound, bound)
        return w, b

    k1, k2, k3 = jax.random.split(key, 3)
    w1, b1 = linear(k1, 4, 24)
    w2, b2 = linear(k2, 24, 24)
    w3, b3 = linear(k3, 24, 2)
    return w1, b1, w2, b2, w3, b3


def reference_forward(x, w1, b1, w2, b2, w3, b3):
    h1 = jnp.maximum(x @ w1.T + b1.T, 0.0)
    h2 = jnp.maximum(h1 @ w2.T + b2.T, 0.0)
    return h2 @ w3.T + b3.T


if __name__ == "__main__":
    key = jax.random.PRNGKey(0)
    kx_small, kx_big, kp = jax.random.split(key, 3)
    params = init_params(kp)

    # Small CartPole-like batch (4-dim observation), single grid step.
    x_small = jax.random.normal(kx_small, (8, 4), jnp.float32)
    out_small = qnetwork_forward(x_small, *params)
    jax.block_until_ready(out_small)
    ref_small = reference_forward(x_small, *params)
    assert out_small.shape == (8, 2)
    assert jnp.allclose(out_small, ref_small, atol=1e-5, rtol=1e-5), "small-batch mismatch"

    # Replay-buffer-style batch: exercises the tiled path (grid=3, ragged batch
    # padded to 1536) with weights held VMEM-resident across tiles.
    x_big = jax.random.normal(kx_big, (1280, 4), jnp.float32)
    out_big = qnetwork_forward(x_big, *params)
    jax.block_until_ready(out_big)
    ref_big = reference_forward(x_big, *params)
    assert out_big.shape == (1280, 2)
    assert jnp.allclose(out_big, ref_big, atol=1e-4, rtol=1e-4), "big-batch mismatch"

    print("KERNEL_OK")
</pallas_src>

<mosaic_0001>
module attributes {stable_mosaic.version = 11 : i64} {
  func.func @_qnet_kernel(%arg0: i32, %arg1: memref<4x8xf32, #tpu.memory_space<vmem>>, %arg2: memref<24x4xf32, #tpu.memory_space<vmem>>, %arg3: memref<24x1xf32, #tpu.memory_space<vmem>>, %arg4: memref<24x24xf32, #tpu.memory_space<vmem>>, %arg5: memref<24x1xf32, #tpu.memory_space<vmem>>, %arg6: memref<2x24xf32, #tpu.memory_space<vmem>>, %arg7: memref<2x1xf32, #tpu.memory_space<vmem>>, %arg8: memref<2x8xf32, #tpu.memory_space<vmem>>) attributes {dimension_semantics = [#tpu.dimension_semantics<parallel>], iteration_bounds = array<i64: 1>, scalar_prefetch = 0 : i64, scratch_operands = 0 : i64, tpu.core_type = #tpu.core_type<tc>, window_params = [{transform_indices = @transform_0, window_bounds = array<i64: 4, 8>}, {pipeline_mode = #tpu.pipeline_mode<synchronous>, transform_indices = @transform_1, window_bounds = array<i64: 24, 4>}, {pipeline_mode = #tpu.pipeline_mode<synchronous>, transform_indices = @transform_2, window_bounds = array<i64: 24, 1>}, {pipeline_mode = #tpu.pipeline_mode<synchronous>, transform_indices = @transform_3, window_bounds = array<i64: 24, 24>}, {pipeline_mode = #tpu.pipeline_mode<synchronous>, transform_indices = @transform_4, window_bounds = array<i64: 24, 1>}, {pipeline_mode = #tpu.pipeline_mode<synchronous>, transform_indices = @transform_5, window_bounds = array<i64: 2, 24>}, {pipeline_mode = #tpu.pipeline_mode<synchronous>, transform_indices = @transform_6, window_bounds = array<i64: 2, 1>}, {transform_indices = @transform_7, window_bounds = array<i64: 2, 8>}]} {
    %c0 = arith.constant 0 : index
    %c0_0 = arith.constant 0 : index
    %0 = vector.load %arg1[%c0, %c0_0] : memref<4x8xf32, #tpu.memory_space<vmem>>, vector<4x8xf32>
    %c0_1 = arith.constant 0 : index
    %c0_2 = arith.constant 0 : index
    %1 = vector.load %arg2[%c0_1, %c0_2] : memref<24x4xf32, #tpu.memory_space<vmem>>, vector<24x4xf32>
    %cst = arith.constant dense<0.000000e+00> : vector<24x8xf32>
    %2 = tpu.matmul %1, %0, %cst {dimension_numbers = #tpu.dot_dimension_numbers<[1], [0], [0], [1], [0, 0, 1, 1], [], []>} : vector<24x4xf32>, vector<4x8xf32>, vector<24x8xf32> -> vector<24x8xf32>
    %c0_3 = arith.constant 0 : index
    %c0_4 = arith.constant 0 : index
    %3 = vector.load %arg3[%c0_3, %c0_4] : memref<24x1xf32, #tpu.memory_space<vmem>>, vector<24x1xf32>
    %4 = vector.broadcast %3 : vector<24x1xf32> to vector<24x8xf32>
    %5 = arith.addf %2, %4 : vector<24x8xf32>
    %cst_5 = arith.constant 0.000000e+00 : f32
    %6 = vector.broadcast %cst_5 : f32 to vector<24x8xf32>
    %7 = arith.maximumf %5, %6 : vector<24x8xf32>
    %c0_6 = arith.constant 0 : index
    %c0_7 = arith.constant 0 : index
    %8 = vector.load %arg4[%c0_6, %c0_7] : memref<24x24xf32, #tpu.memory_space<vmem>>, vector<24x24xf32>
    %cst_8 = arith.constant dense<0.000000e+00> : vector<24x8xf32>
    %9 = tpu.matmul %8, %7, %cst_8 {dimension_numbers = #tpu.dot_dimension_numbers<[1], [0], [0], [1], [0, 0, 1, 1], [], []>} : vector<24x24xf32>, vector<24x8xf32>, vector<24x8xf32> -> vector<24x8xf32>
    %c0_9 = arith.constant 0 : index
    %c0_10 = arith.constant 0 : index
    %10 = vector.load %arg5[%c0_9, %c0_10] : memref<24x1xf32, #tpu.memory_space<vmem>>, vector<24x1xf32>
    %11 = vector.broadcast %10 : vector<24x1xf32> to vector<24x8xf32>
    %12 = arith.addf %9, %11 : vector<24x8xf32>
    %cst_11 = arith.constant 0.000000e+00 : f32
    %13 = vector.broadcast %cst_11 : f32 to vector<24x8xf32>
    %14 = arith.maximumf %12, %13 : vector<24x8xf32>
    %c0_12 = arith.constant 0 : index
    %c0_13 = arith.constant 0 : index
    %15 = vector.load %arg6[%c0_12, %c0_13] : memref<2x24xf32, #tpu.memory_space<vmem>>, vector<2x24xf32>
    %cst_14 = arith.constant dense<0.000000e+00> : vector<2x8xf32>
    %16 = tpu.matmul %15, %14, %cst_14 {dimension_numbers = #tpu.dot_dimension_numbers<[1], [0], [0], [1], [0, 0, 1, 1], [], []>} : vector<2x24xf32>, vector<24x8xf32>, vector<2x8xf32> -> vector<2x8xf32>
    %c0_15 = arith.constant 0 : index
    %c0_16 = arith.constant 0 : index
    %17 = vector.load %arg7[%c0_15, %c0_16] : memref<2x1xf32, #tpu.memory_space<vmem>>, vector<2x1xf32>
    %18 = vector.broadcast %17 : vector<2x1xf32> to vector<2x8xf32>
    %19 = arith.addf %16, %18 : vector<2x8xf32>
    %c0_17 = arith.constant 0 : index
    %c0_18 = arith.constant 0 : index
    %20 = vector.load %arg8[%c0_17, %c0_18] : memref<2x8xf32, #tpu.memory_space<vmem>>, vector<2x8xf32>
    tpu.vector_store %arg8[%c0_17, %c0_18], %19 {strides = array<i32>} : memref<2x8xf32, #tpu.memory_space<vmem>>, vector<2x8xf32>,
    return
  }
  func.func @transform_0(%arg0: i32) -> (i32, i32) {
    %c0_i32 = arith.constant 0 : i32
    %c0_i32_0 = arith.constant 0 : i32
    return %c0_i32, %arg0 : i32, i32
  }
  func.func @transform_1(%arg0: i32) -> (i32, i32) {
    %c0_i32 = arith.constant 0 : i32
    %c0_i32_0 = arith.constant 0 : i32
    %c0_i32_1 = arith.constant 0 : i32
    return %c0_i32, %c0_i32_0 : i32, i32
  }
  func.func @transform_2(%arg0: i32) -> (i32, i32) {
    %c0_i32 = arith.constant 0 : i32
    %c0_i32_0 = arith.constant 0 : i32
    %c0_i32_1 = arith.constant 0 : i32
    return %c0_i32, %c0_i32_0 : i32, i32
  }
  func.func @transform_3(%arg0: i32) -> (i32, i32) {
    %c0_i32 = arith.constant 0 : i32
    %c0_i32_0 = arith.constant 0 : i32
    %c0_i32_1 = arith.constant 0 : i32
    return %c0_i32, %c0_i32_0 : i32, i32
  }
  func.func @transform_4(%arg0: i32) -> (i32, i32) {
    %c0_i32 = arith.constant 0 : i32
    %c0_i32_0 = arith.constant 0 : i32
    %c0_i32_1 = arith.constant 0 : i32
    return %c0_i32, %c0_i32_0 : i32, i32
  }
  func.func @transform_5(%arg0: i32) -> (i32, i32) {
    %c0_i32 = arith.constant 0 : i32
    %c0_i32_0 = arith.constant 0 : i32
    %c0_i32_1 = arith.constant 0 : i32
    return %c0_i32, %c0_i32_0 : i32, i32
  }
  func.func @transform_6(%arg0: i32) -> (i32, i32) {
    %c0_i32 = arith.constant 0 : i32
    %c0_i32_0 = arith.constant 0 : i32
    %c0_i32_1 = arith.constant 0 : i32
    return %c0_i32, %c0_i32_0 : i32, i32
  }
  func.func @transform_7(%arg0: i32) -> (i32, i32) {
    %c0_i32 = arith.constant 0 : i32
    %c0_i32_0 = arith.constant 0 : i32
    return %c0_i32, %arg0 : i32, i32
  }
}

</mosaic_0001>

<bundles_post_ra>
// kernel: qnetwork_forward.1
= control target key start
LH: loop header
LB: loop body
LE: loop exit
PB: predicated region body
PF: predicated region fallthrough
CT: control target
= control target key end

     0   :  { %vm59_vm0 = vcmask 1043456   ;;  %v450_v2 = vmov 0.0   ;;  %vm451_vm1 = vmmov 0   ;;  %vm49_vm2 = vcmask 31744   ;;  %s576_s0 = inlined_call_operand.vmem [shape: f32[4,8], index: 0, kind: input, shape index: {}]   ;;  %s577_s1 = inlined_call_operand.vmem [shape: f32[24,4], index: 1, kind: input, shape index: {}]   ;;  %s578_s2 = inlined_call_operand.vmem [shape: f32[24,1], index: 2, kind: input, shape index: {}]   ;;  %s579_s3 = inlined_call_operand.vmem [shape: f32[24,24], index: 3, kind: input, shape index: {}]   ;;  %s580_s4 = inlined_call_operand.vmem [shape: f32[24,1], index: 4, kind: input, shape index: {}]   ;;  %s581_s5 = inlined_call_operand.vmem [shape: f32[2,24], index: 5, kind: input, shape index: {}]   ;;  %s582_s6 = inlined_call_operand.vmem [shape: f32[2,1], index: 6, kind: input, shape index: {}]   ;;  %s583_s7 = inlined_call_operand.hbm [shape: f32[2,8], index: 7, kind: output, shape index: {}]  }
   0x1   :  { %v27_v0 = vld [vmem:[%s576_s0] sm:$0xf]  ;;  %378 = vmatprep.subr.mxu0 %v450_v2  ;;  %380 = vmatprep.mubr.msk.f32.mxu0 %vm451_vm1, %v450_v2  ;;  %v452_v4 = vmov 0   ;;  %v33_v5 = vld [vmem:[%s578_s2 + $0x10] sm:$0xff]  ;;  %v29_v6 = vld [vmem:[%s577_s1 + $0x8] sm:$0xff] }
   0x2   :  { %v28_v1 = vld [vmem:[%s577_s1] sm:$0xff]  ;;  %379 = vmatpush3.msk.msra.mxu0 %vm59_vm0, %v27_v0  ;;  %424 = vset.pattern.permute.xlu0 %v452_v4  ;;  %v32_v7 = vld [vmem:[%s578_s2 + $0x8] sm:$0xff] }
   0x3   :  { %v31_v3 = vld [vmem:[%s578_s2] sm:$0xff]  ;;  %381 = vmatmul.mubr.msk.f32.vlgmr.msra.gmra.mrb[0].mxu0 %vm49_vm2, %v28_v1  ;;  %425 = vset.pattern.permute.xlu1 %v452_v4 }
   0x4   :  { %36 = vperm.xlu0 %424, %v31_v3   ;;  %383 = vmatprep.mubr.msk.f32.mxu0 %vm451_vm1, %v450_v2 }
   0x5   :  { %12 = vsyncpa [#allocation3], 0  ;;  %46 = vperm.xlu1 %425, %v33_v5   ;;  %395 = vmatprep.mubr.msk.f32.mxu1 %vm451_vm1, %v450_v2  ;;  %v149_v8 = vld [vmem:[%s580_s4] sm:$0xff]  ;;  %v30_v9 = vld [vmem:[%s577_s1 + $0x10] sm:$0xff]  ;;  %v453_v13 = vmov 0.0|0.0   ;;  %vm167_vm3 = vcmask 195584  }
   0x6   :  { %v150_v10 = vld [vmem:[%s580_s4 + $0x8] sm:$0xff]  ;;  %v151_v11 = vld [vmem:[%s580_s4 + $0x10] sm:$0xff]  ;;  %v261_v12 = vld [vmem:[%s582_s6] sm:$0x3]  ;;  %413 = vmatprep.subr.bf16.mxu1 %v453_v13  ;;  %416 = vmatprep.subr.bf16.mxu0 %v453_v13  ;;  %s454_s25 = smov [#allocation2]   ;;  %vm340_vm4 = vcmask 58368  }
   0x7   :  { %384 = vmatmul.mubr.msk.f32.gmra.mrb[2].mxu0 %vm49_vm2, %v29_v6  ;;  %v146_v30 = vld [vmem:[%s579_s3] sm:$0xff]  ;;  %v147_v31 = vld [vmem:[%s579_s3 + $0x8] sm:$0xff]  ;;  %v148_v32 = vld [vmem:[%s579_s3 + $0x10] sm:$0xff]  ;;  %s348_s26 = sshll.u32 %s454_s25, 4  ;;  %s349_s26 = int_to_ptr.vmem [resolvable:$true] %s348_s26 }
   0x8   :  { %41 = vperm.xlu0 %424, %v32_v7   ;;  %386 = vmatprep.mubr.msk.f32.mxu0 %vm451_vm1, %v450_v2  ;;  %v260_v49 = vld [vmem:[%s581_s5] sm:$0x3]  ;;  %s426_s27 = scalar_lea.vmem %s349_s26, 32  ;;  %p431_p1 = scmp.lt.s32.totalorder %s349_s26, %s349_s26 }
   0x9   :  { %154 = vperm.xlu1 %425, %v149_v8   ;;  %p427_p0 = scmp.ne.s32.totalorder %s349_s26, %s426_s27  ;;  %p432_p2 = scmp.lt.s32.totalorder %s426_s27, %s426_s27 }
   0xb   :  { %387 = vmatmul.mubr.msk.f32.gmra.mrb[4].mxu0 %vm49_vm2, %v30_v9  ;;  %p433_p3 = por %p432_p2, %p431_p1 }
   0xc   :  { %159 = vperm.xlu0 %424, %v150_v10   ;;  %410 = vmatprep.mubr.msk.f32.mxu0 %vm451_vm1, %v450_v2 }
   0xd   :  { %164 = vperm.xlu1 %425, %v151_v11   ;;  %p434_p4 = pnand %p433_p3, %p427_p0 }
  0x10   :  { %264 = vperm.xlu0 %424, %v261_v12  }
  0x83   :  { %v37_v14 = vpop.permute.xlu0 %36 }
  0x84   :  { %v47_v24 = vpop.permute.xlu1 %46 }
  0x87   :  { %v42_v18 = vpop.permute.xlu0 %41 }
  0x88   :  { %v155_v35 = vpop.permute.xlu1 %154 }
  0x8b   :  { %v160_v37 = vpop.permute.xlu0 %159 }
  0x8c   :  { %v165_v43 = vpop.permute.xlu1 %164 }
  0x8f   :  { %v265_v50 = vpop.permute.xlu0 %264 }
  0xd6   :  { %v129_v15 = vpop.f32.mrb[0].mxu0 }
  0xd7   :  { %v382_v16 = vpop.f32.mrb[1].mxu0  ;;  %v130_v17 = vadd.f32 %v129_v15, %v37_v14 }
  0xd9   :  { %v143_v22 = vmax.f32 %v130_v17, 0.0 }
  0xda   :  { %v134_v19 = vpop.f32.mrb[2].mxu0 }
  0xdb   :  { %v135_v20 = vadd.f32 %v134_v19, %v42_v18  ;;  %v385_v21 = vpop.f32.mrb[3].mxu0 }
  0xdd   :  { %v144_v23 = vmax.f32 %v135_v20, 0.0 }
  0xde   :  { %v139_v25 = vpop.f32.mrb[4].mxu0 }
  0xdf   :  { %v140_v26 = vadd.f32 %v139_v25, %v47_v24  ;;  %v388_v27 = vpop.f32.mrb[5].mxu0  ;;  %v414_v28 = vpack.c.bf16 %v144_v23, %v143_v22 }
  0xe1   :  { %v145_v29 = vmax.f32 %v140_v26, 0.0  ;;  %415 = vmatpush3.bf16.msra.mxu1 %v414_v28 }
  0xe2   :  { %393 = vmatprep.subr.mxu1 %v450_v2 }
  0xe5   :  { %394 = vmatpush3.msra.mxu1 %v145_v29 }
  0xe6   :  { %396 = vmatmul.mubr.msk.f32.vlgmr.msra.gmra.mrb[0].mxu1 %vm167_vm3, %v146_v30 }
  0xe7   :  { %398 = vmatprep.mubr.msk.f32.mxu1 %vm451_vm1, %v450_v2 }
  0xea   :  { %399 = vmatmul.mubr.msk.f32.gmra.mrb[2].mxu1 %vm167_vm3, %v147_v31 }
  0xeb   :  { %401 = vmatprep.mubr.msk.f32.mxu1 %vm451_vm1, %v450_v2 }
  0xee   :  { %402 = vmatmul.mubr.msk.f32.gmra.mrb[4].mxu1 %vm167_vm3, %v148_v32 }
 0x1b9   :  { %v243_v33 = vpop.f32.mrb[0].mxu1 }
 0x1ba   :  { %v397_v34 = vpop.f32.mrb[1].mxu1  ;;  %v244_v36 = vadd.f32 %v243_v33, %v155_v35 }
 0x1bc   :  { %v257_v41 = vmax.f32 %v244_v36, 0.0 }
 0x1bd   :  { %v248_v38 = vpop.f32.mrb[2].mxu1 }
 0x1be   :  { %v249_v39 = vadd.f32 %v248_v38, %v160_v37  ;;  %v400_v40 = vpop.f32.mrb[3].mxu1 }
 0x1c0   :  { %v258_v42 = vmax.f32 %v249_v39, 0.0 }
 0x1c1   :  { %v253_v44 = vpop.f32.mrb[4].mxu1 }
 0x1c2   :  { %v417_v45 = vpack.c.bf16 %v258_v42, %v257_v41  ;;  %v254_v46 = vadd.f32 %v253_v44, %v165_v43  ;;  %v403_v47 = vpop.f32.mrb[5].mxu1 }
 0x1c4   :  { %418 = vmatpush3.bf16.msra.mxu0 %v417_v45  ;;  %v259_v48 = vmax.f32 %v254_v46, 0.0 }
 0x1c5   :  { %408 = vmatprep.subr.mxu0 %v450_v2 }
 0x1c8   :  { %409 = vmatpush3.msra.mxu0 %v259_v48 }
 0x1c9   :  { %411 = vmatmul.mubr.msk.f32.vlgmr.msra.gmra.mrb[6].mxu0 %vm167_vm3, %v260_v49 }
 0x29c   :  { %v336_v51 = vpop.f32.mrb[6].mxu0 }
 0x29d   :  { %v337_v52 = vadd.f32 %v336_v51, %v265_v50  ;;  %v412_v53 = vpop.f32.mrb[7].mxu0 }
 0x29f   :  { %341 = vst.msk [vmem:[#allocation2] sm:$0x3] %vm340_vm4, %v337_v52 }
 0x2a0   :  { %437 = shalt.err (!%p434_p4)
}
 0x2a1   :  { %s438_s29 = scalar_lea.hbm %s583_s7, 32 }
 0x2a2   :  { %p439_p5 = scmp.ne.s32.totalorder %s583_s7, %s438_s29  ;;  %p442_p6 = scmp.lt.u32.totalorder %s438_s29, %s583_s7 }
 0x2a4   :  { %p444_p7 = pnand %p442_p6, %p439_p5 }
 0x2a6   :  { %447 = shalt.err (!%p444_p7)
}
 0x2a7   :  { %351 = dma.vmem_to_hbm [thread:$0]  %s349_s26, 32, %s583_s7, [#allocation3]  }
 0x2a8   :  { %448 = dma.done.wait [#allocation3], 32  }
 0x2a9   :  { %449 = vsyncadd [#allocation3], 4294967264 }
 0x2aa   :  { %355 = vsyncpa [#allocation3], 1 }

</bundles_post_ra>
